<compile_context>
chip_gen: v7x
topology: tpu7x:2x2x1
jax: 0.10.0
libtpu: 0.0.40
codegen_flags: <defaults>
</compile_context>

<pallas_src>
import jax
import jax.numpy as jnp
from jax.experimental import pallas as pl
from jax.experimental.pallas import tpu as pltpu

LANE = 128
MAX_TILE = 2048


def _round_up(x, m):
    return ((x + m - 1) // m) * m


# ---------------------------------------------------------------------------
# Kernel factory
# ---------------------------------------------------------------------------
def _make_gcn_kernel(tile, x_resident, fused_linear):
    """GCN layer kernel: acc += A_tile @ X_tile over k; finalize once per row tile.

    finalize: h = ReLU(acc @ W' + t)  (BN scale folded into W', bias+BN shift in t)
    fused_linear additionally applies the final Linear: o = h @ W_lin + b_lin.
    """

    def kernel(*refs):
        if fused_linear:
            a_ref, x_ref, w_ref, t_ref, wl_ref, bl_ref, o_ref, acc_ref = refs
        else:
            a_ref, x_ref, w_ref, t_ref, o_ref, acc_ref = refs
        k = pl.program_id(1)

        @pl.when(k == 0)
        def _init():
            acc_ref[...] = jnp.zeros_like(acc_ref)

        if x_resident:
            # X is VMEM-resident for the whole layer; slice the k-th row block.
            xk = x_ref[pl.ds(pl.multiple_of(k * tile, tile), tile), :]
        else:
            xk = x_ref[...]
        acc_ref[...] += jnp.dot(a_ref[...], xk, preferred_element_type=jnp.float32)

        @pl.when(k == pl.num_programs(1) - 1)
        def _finalize():
            # BN scale pre-folded into W; epilogue from the f32 accumulator
            # (MXU is far below the HBM roofline here, so f32 is free filler).
            h = jnp.dot(acc_ref[...], w_ref[...], preferred_element_type=jnp.float32)
            h = jnp.maximum(h + t_ref[...], 0.0)   # dropout == identity (eval)
            if fused_linear:
                o_ref[...] = (jnp.dot(h, wl_ref[...],
                                      preferred_element_type=jnp.float32)
                              + bl_ref[...])
            else:
                o_ref[...] = h.astype(o_ref.dtype)

    return kernel


# ---------------------------------------------------------------------------
# Tile / VMEM configuration
# ---------------------------------------------------------------------------
def _vmem_capacity_bytes():
    try:
        return int(pltpu.get_tpu_info().vmem_capacity_bytes)
    except Exception:
        return 64 * 1024 * 1024   # conservative: v7x per-TensorCore VMEM


def _layer_vmem_bytes(tile, n_pad, f_in, h_out, out_cols, out_itemsize,
                      x_resident, fused_cols):
    a_bytes = 2 * tile * tile * 2                       # A (bf16, double buffered)
    if x_resident:
        x_bytes = 2 * n_pad * f_in * 2                  # resident X (count 2 bufs)
    else:
        x_bytes = 2 * tile * f_in * 2                   # streamed X blocks
    w_bytes = 2 * f_in * h_out * 4                      # W' (f32)
    t_bytes = 2 * h_out * 4                             # shift
    acc_bytes = tile * f_in * 4                         # f32 accumulator scratch
    out_bytes = 2 * tile * out_cols * out_itemsize      # output blocks
    tail = 2 * (h_out * fused_cols * 4 + fused_cols * 4) if fused_cols else 0
    return a_bytes + x_bytes + w_bytes + t_bytes + acc_bytes + out_bytes + tail


def _choose_config(n_pad, f_in, h_out, out_cols, out_itemsize, fused_cols,
                   vmem_budget):
    """Largest 128-multiple tile dividing n_pad, preferring >=2 row tiles
    (v7x megacore) and VMEM-resident X, under the per-TC VMEM budget."""
    n_blocks = n_pad // LANE
    candidates = [d * LANE for d in range(min(n_blocks, MAX_TILE // LANE), 0, -1)
                  if n_blocks % d == 0]
    pref = [t for t in candidates if n_pad // t >= 2] or candidates
    for tile in pref:
        for x_resident in (True, False):
            need = _layer_vmem_bytes(tile, n_pad, f_in, h_out, out_cols,
                                     out_itemsize, x_resident, fused_cols)
            if need <= vmem_budget:
                return tile, x_resident
    return pref[-1], False


# ---------------------------------------------------------------------------
# Per-layer pallas_call wrapper
# ---------------------------------------------------------------------------
def _run_gcn_layer(a, x, w, t, tile, x_resident, vmem_limit, *, wl=None, bl=None):
    n_pad = a.shape[0]
    f_in = x.shape[1]
    h_out = w.shape[1]
    grid = (n_pad // tile, n_pad // tile)    # (row tiles: parallel, k: reduction last)
    row_tiles = grid[0]

    if x_resident:
        # Constant index_map -> X is DMA'd to VMEM once per layer (no re-streaming).
        x_spec = pl.BlockSpec((n_pad, f_in), lambda i, k: (0, 0))
    else:
        x_spec = pl.BlockSpec((tile, f_in), lambda i, k: (k, 0))

    # TODO(synk): if exposed DMA remains at small tiles, sweep
    # pipeline_mode=pl.Buffered(3) on the A spec (measured sweep, not default).
    in_specs = [
        pl.BlockSpec((tile, tile), lambda i, k: (i, k)),   # A tile (bf16, streamed)
        x_spec,                                            # X
        pl.BlockSpec((f_in, h_out), lambda i, k: (0, 0)),  # W' (scale-folded, f32)
        pl.BlockSpec((1, h_out), lambda i, k: (0, 0)),     # shift (BN + conv bias)
    ]
    args = [a, x, w, t]

    fused = wl is not None
    if fused:
        out_cols, out_dtype = wl.shape[1], jnp.float32
        in_specs += [
            pl.BlockSpec((h_out, out_cols), lambda i, k: (0, 0)),  # W_lin
            pl.BlockSpec((1, out_cols), lambda i, k: (0, 0)),      # b_lin
        ]
        args += [wl, bl]
        tail_flops = 2 * n_pad * h_out * out_cols
        tail_bytes = wl.size * 4 + bl.size * 4
    else:
        out_cols, out_dtype = h_out, jnp.bfloat16
        tail_flops = 0
        tail_bytes = 0

    out_itemsize = jnp.dtype(out_dtype).itemsize
    x_reads = 1 if x_resident else row_tiles
    flops = 2 * n_pad * n_pad * f_in + 2 * n_pad * f_in * h_out + tail_flops
    bytes_accessed = (n_pad * n_pad * 2                     # A (read once)
                      + x_reads * n_pad * f_in * 2          # X
                      + n_pad * out_cols * out_itemsize     # output
                      + f_in * h_out * 4 + h_out * 4 + tail_bytes)

    kernel = _make_gcn_kernel(tile, x_resident, fused)

    return pl.pallas_call(
        kernel,
        out_shape=jax.ShapeDtypeStruct((n_pad, out_cols), out_dtype),
        grid_spec=pltpu.PrefetchScalarGridSpec(
            num_scalar_prefetch=0,
            grid=grid,
            in_specs=in_specs,
            out_specs=pl.BlockSpec((tile, out_cols), lambda i, k: (i, 0)),
            scratch_shapes=[pltpu.VMEM((tile, f_in), jnp.float32)],
        ),
        compiler_params=pltpu.CompilerParams(
            dimension_semantics=("parallel", "arbitrary"),
            vmem_limit_bytes=int(vmem_limit),
        ),
        cost_estimate=pl.CostEstimate(
            flops=int(flops), transcendentals=0,
            bytes_accessed=int(bytes_accessed)),
    )(*args)


# ---------------------------------------------------------------------------
# Glue: adjacency normalization, padding, parameter folding
# ---------------------------------------------------------------------------
def build_normalized_adjacency(edge_index, num_nodes):
    """Dense A_hat = D^-1/2 (A + remaining self loops) D^-1/2 from COO [2, E]."""
    # TODO(synk): for large sparse graphs a scalar-prefetch CSR gather kernel
    # would beat this dense O(N^2) formulation; dense is used here.
    src, dst = edge_index[0], edge_index[1]
    a = jnp.zeros((num_nodes, num_nodes), jnp.float32)
    a = a.at[dst, src].add(1.0)               # message j -> i: row target, col source
    # add_remaining_self_loops: only nodes lacking a self-loop get weight 1.
    diag = jnp.diagonal(a)
    a = a + jnp.diag(jnp.where(diag > 0.0, 0.0, 1.0))
    deg = jnp.sum(a, axis=1)
    d_inv_sqrt = jnp.where(deg > 0, 1.0 / jnp.sqrt(deg), 0.0)
    return a * d_inv_sqrt[:, None] * d_inv_sqrt[None, :]


def _pad2d(x, rows, cols, dtype):
    out = jnp.zeros((rows, cols), dtype)
    return out.at[:x.shape[0], :x.shape[1]].set(x.astype(dtype))


def _pad_row(v, cols, dtype=jnp.float32):
    out = jnp.zeros((1, cols), dtype)
    return out.at[0, :v.shape[0]].set(v.astype(dtype))


def gcn_model_forward(x, edge_index, params, *, tile=None):
    n, input_dim = x.shape
    hidden = params["w1"].shape[1]
    out_dim = params["wl"].shape[1]

    # Pad N only to the lane width; the tile is chosen independently below so
    # awkward graph sizes don't inflate A's HBM traffic.
    n_pad = _round_up(n, LANE)
    f1 = _round_up(input_dim, LANE)
    hp = _round_up(hidden, LANE)
    op = _round_up(out_dim, LANE)

    vmem_cap = _vmem_capacity_bytes()
    vmem_budget = int(vmem_cap * 0.85)        # headroom below per-TC capacity
    f_max = max(f1, hp)
    if tile is None:
        tile, x_resident = _choose_config(n_pad, f_max, hp, max(hp, op), 4, op,
                                          vmem_budget)
    else:
        x_resident = _layer_vmem_bytes(tile, n_pad, f_max, hp, max(hp, op), 4,
                                       True, op) <= vmem_budget

    a_hat = build_normalized_adjacency(edge_index, n)
    a_pad = _pad2d(a_hat, n_pad, n_pad, jnp.bfloat16)
    x_pad = _pad2d(x, n_pad, f1, jnp.bfloat16)

    def fold(w, b, bn, eps=1e-5):
        gamma, beta, mean, var = bn
        scale = gamma / jnp.sqrt(var + eps)
        shift = beta + (b - mean) * scale     # fold GCNConv bias into BN shift
        return w * scale[None, :], shift      # fold BN scale into W columns

    w1, t1 = fold(params["w1"], params["b1"], params["bn1"])
    w2, t2 = fold(params["w2"], params["b2"], params["bn2"])
    w3, t3 = fold(params["w3"], params["b3"], params["bn3"])

    # TODO(synk): dropout is identity (eval mode); training-mode stochastic
    # dropout / batch-statistics BN is not implemented.
    h = _run_gcn_layer(a_pad, x_pad, _pad2d(w1, f1, hp, jnp.float32),
                       _pad_row(t1, hp), tile, x_resident, vmem_budget)
    h = _run_gcn_layer(a_pad, h, _pad2d(w2, hp, hp, jnp.float32),
                       _pad_row(t2, hp), tile, x_resident, vmem_budget)
    out = _run_gcn_layer(a_pad, h, _pad2d(w3, hp, hp, jnp.float32),
                         _pad_row(t3, hp), tile, x_resident, vmem_budget,
                         wl=_pad2d(params["wl"], hp, op, jnp.float32),
                         bl=_pad_row(params["bl"], op))
    return out[:n, :out_dim].reshape(-1)      # x.view(-1)


# ---------------------------------------------------------------------------
# Parameters, pure-JAX reference, demo
# ---------------------------------------------------------------------------
def init_params(key, input_dim, hidden_dim, output_dim):
    ks = jax.random.split(key, 14)

    def glorot(k, fan_in, fan_out):
        lim = (6.0 / (fan_in + fan_out)) ** 0.5
        return jax.random.uniform(k, (fan_in, fan_out), jnp.float32, -lim, lim)

    params = {
        "w1": glorot(ks[0], input_dim, hidden_dim),
        "b1": jnp.zeros((hidden_dim,), jnp.float32),
        "w2": glorot(ks[1], hidden_dim, hidden_dim),
        "b2": jnp.zeros((hidden_dim,), jnp.float32),
        "w3": glorot(ks[2], hidden_dim, hidden_dim),
        "b3": jnp.zeros((hidden_dim,), jnp.float32),
        "wl": glorot(ks[3], hidden_dim, output_dim),
        "bl": jax.random.uniform(ks[4], (output_dim,), jnp.float32, -0.1, 0.1),
    }
    for i, name in enumerate(["bn1", "bn2", "bn3"]):
        gamma = 1.0 + 0.1 * jax.random.normal(ks[5 + i], (hidden_dim,), jnp.float32)
        beta = 0.05 * jax.random.normal(ks[8 + i], (hidden_dim,), jnp.float32)
        running_mean = 0.02 * jax.random.normal(ks[11 + i], (hidden_dim,), jnp.float32)
        running_var = jnp.ones((hidden_dim,), jnp.float32)
        params[name] = (gamma, beta, running_mean, running_var)
    return params


def gcn_model_reference(x, edge_index, params, eps=1e-5):
    a = build_normalized_adjacency(edge_index, x.shape[0])

    def layer(h, w, b, bn):
        gamma, beta, mean, var = bn
        h = a @ (h @ w) + b
        h = (h - mean) / jnp.sqrt(var + eps) * gamma + beta
        return jnp.maximum(h, 0.0)

    h = layer(x, params["w1"], params["b1"], params["bn1"])
    h = layer(h, params["w2"], params["b2"], params["bn2"])
    h = layer(h, params["w3"], params["b3"], params["bn3"])
    return (h @ params["wl"] + params["bl"]).reshape(-1)


if __name__ == "__main__":
    # Small graph: 8 nodes, input_dim=16, hidden_dim=32, output_dim=1.
    N, INPUT_DIM, HIDDEN_DIM, OUTPUT_DIM = 8, 16, 32, 1

    key = jax.random.PRNGKey(0)
    k_x, k_p = jax.random.split(key)
    x = jax.random.normal(k_x, (N, INPUT_DIM), jnp.float32)

    # Undirected ring graph as edge_index [2, E] (both directions).
    src = jnp.arange(N, dtype=jnp.int32)
    dst = (src + 1) % N
    edge_index = jnp.concatenate(
        [jnp.stack([src, dst], axis=0), jnp.stack([dst, src], axis=0)], axis=1)

    params = init_params(k_p, INPUT_DIM, HIDDEN_DIM, OUTPUT_DIM)

    out = gcn_model_forward(x, edge_index, params)
    jax.block_until_ready(out)
    assert out.shape == (N * OUTPUT_DIM,)

    ref = gcn_model_reference(x, edge_index, params)
    rel_err = float(jnp.max(jnp.abs(out - ref)) / (jnp.max(jnp.abs(ref)) + 1e-6))
    assert rel_err < 0.05, f"relative error too large: {rel_err}"

    print("KERNEL_OK")
</pallas_src>

<mosaic_0001>
module attributes {stable_mosaic.version = 11 : i64} {
  func.func @kernel(%arg0: i32, %arg1: i32, %arg2: memref<128x128xbf16, #tpu.memory_space<vmem>>, %arg3: memref<128x128xbf16, #tpu.memory_space<vmem>>, %arg4: memref<128x128xf32, #tpu.memory_space<vmem>>, %arg5: memref<1x128xf32, #tpu.memory_space<vmem>>, %arg6: memref<128x128xbf16, #tpu.memory_space<vmem>>, %arg7: memref<128x128xf32, #tpu.memory_space<vmem>>) attributes {dimension_semantics = [#tpu.dimension_semantics<parallel>, #tpu.dimension_semantics<arbitrary>], iteration_bounds = array<i64: 1, 1>, scalar_prefetch = 0 : i64, scratch_operands = 1 : i64, tpu.core_type = #tpu.core_type<tc>, window_params = [{transform_indices = @transform_0, window_bounds = array<i64: 128, 128>}, {pipeline_mode = #tpu.pipeline_mode<synchronous>, transform_indices = @transform_1, window_bounds = array<i64: 128, 128>}, {pipeline_mode = #tpu.pipeline_mode<synchronous>, transform_indices = @transform_2, window_bounds = array<i64: 128, 128>}, {pipeline_mode = #tpu.pipeline_mode<synchronous>, transform_indices = @transform_3, window_bounds = array<i64: 1, 128>}, {transform_indices = @transform_4, window_bounds = array<i64: 128, 128>}]} {
    %c0_i32 = arith.constant 0 : i32
    %0 = arith.cmpi eq, %arg1, %c0_i32 : i32
    %1 = arith.extui %0 : i1 to i32
    %c0_i32_0 = arith.constant 0 : i32
    %2 = arith.cmpi ne, %1, %c0_i32_0 : i32
    scf.if %2 {
      %cst_9 = arith.constant 0.000000e+00 : f32
      %15 = vector.broadcast %cst_9 : f32 to vector<128x128xf32>
      %c0_10 = arith.constant 0 : index
      %c0_11 = arith.constant 0 : index
      %16 = vector.load %arg7[%c0_10, %c0_11] : memref<128x128xf32, #tpu.memory_space<vmem>>, vector<128x128xf32>
      tpu.vector_store %arg7[%c0_10, %c0_11], %15 {strides = array<i32>} : memref<128x128xf32, #tpu.memory_space<vmem>>, vector<128x128xf32>,
    } else {
    }
    %c128_i32 = arith.constant 128 : i32
    %3 = arith.muli %arg1, %c128_i32 : i32
    %4 = tpu.assume_multiple %3, 128 : i32
    %5 = arith.index_cast %4 : i32 to index
    %c0 = arith.constant 0 : index
    %6 = vector.load %arg3[%5, %c0] : memref<128x128xbf16, #tpu.memory_space<vmem>>, vector<128x128xbf16>
    %c0_1 = arith.constant 0 : index
    %c0_2 = arith.constant 0 : index
    %7 = vector.load %arg7[%c0_1, %c0_2] : memref<128x128xf32, #tpu.memory_space<vmem>>, vector<128x128xf32>
    %c0_3 = arith.constant 0 : index
    %c0_4 = arith.constant 0 : index
    %8 = vector.load %arg2[%c0_3, %c0_4] : memref<128x128xbf16, #tpu.memory_space<vmem>>, vector<128x128xbf16>
    %cst = arith.constant dense<0.000000e+00> : vector<128x128xf32>
    %9 = tpu.matmul %8, %6, %cst {dimension_numbers = #tpu.dot_dimension_numbers<[1], [0], [0], [1], [0, 0, 1, 1], [], []>} : vector<128x128xbf16>, vector<128x128xbf16>, vector<128x128xf32> -> vector<128x128xf32>
    %10 = arith.addf %7, %9 : vector<128x128xf32>
    %c0_5 = arith.constant 0 : index
    %c0_6 = arith.constant 0 : index
    %11 = vector.load %arg7[%c0_5, %c0_6] : memref<128x128xf32, #tpu.memory_space<vmem>>, vector<128x128xf32>
    tpu.vector_store %arg7[%c0_5, %c0_6], %10 {strides = array<i32>} : memref<128x128xf32, #tpu.memory_space<vmem>>, vector<128x128xf32>,
    %c0_i32_7 = arith.constant 0 : i32
    %12 = arith.cmpi eq, %arg1, %c0_i32_7 : i32
    %13 = arith.extui %12 : i1 to i32
    %c0_i32_8 = arith.constant 0 : i32
    %14 = arith.cmpi ne, %13, %c0_i32_8 : i32
    scf.if %14 {
      %c0_9 = arith.constant 0 : index
      %c0_10 = arith.constant 0 : index
      %15 = vector.load %arg7[%c0_9, %c0_10] : memref<128x128xf32, #tpu.memory_space<vmem>>, vector<128x128xf32>
      %c0_11 = arith.constant 0 : index
      %c0_12 = arith.constant 0 : index
      %16 = vector.load %arg4[%c0_11, %c0_12] : memref<128x128xf32, #tpu.memory_space<vmem>>, vector<128x128xf32>
      %cst_13 = arith.constant dense<0.000000e+00> : vector<128x128xf32>
      %17 = tpu.matmul %15, %16, %cst_13 {dimension_numbers = #tpu.dot_dimension_numbers<[1], [0], [0], [1], [0, 0, 1, 1], [], []>} : vector<128x128xf32>, vector<128x128xf32>, vector<128x128xf32> -> vector<128x128xf32>
      %c0_14 = arith.constant 0 : index
      %c0_15 = arith.constant 0 : index
      %18 = vector.load %arg5[%c0_14, %c0_15] : memref<1x128xf32, #tpu.memory_space<vmem>>, vector<1x128xf32>
      %19 = vector.broadcast %18 : vector<1x128xf32> to vector<128x128xf32>
      %20 = arith.addf %17, %19 : vector<128x128xf32>
      %cst_16 = arith.constant 0.000000e+00 : f32
      %21 = vector.broadcast %cst_16 : f32 to vector<128x128xf32>
      %22 = arith.maximumf %20, %21 : vector<128x128xf32>
      %23 = arith.truncf %22 : vector<128x128xf32> to vector<128x128xbf16>
      %c0_17 = arith.constant 0 : index
      %c0_18 = arith.constant 0 : index
      %24 = vector.load %arg6[%c0_17, %c0_18] : memref<128x128xbf16, #tpu.memory_space<vmem>>, vector<128x128xbf16>
      tpu.vector_store %arg6[%c0_17, %c0_18], %23 {strides = array<i32>} : memref<128x128xbf16, #tpu.memory_space<vmem>>, vector<128x128xbf16>,
    } else {
    }
    return
  }
  func.func @transform_0(%arg0: i32, %arg1: i32) -> (i32, i32) {
    %c0_i32 = arith.constant 0 : i32
    return %arg0, %arg1 : i32, i32
  }
  func.func @transform_1(%arg0: i32, %arg1: i32) -> (i32, i32) {
    %c0_i32 = arith.constant 0 : i32
    %c0_i32_0 = arith.constant 0 : i32
    %c0_i32_1 = arith.constant 0 : i32
    return %c0_i32, %c0_i32_0 : i32, i32
  }
  func.func @transform_2(%arg0: i32, %arg1: i32) -> (i32, i32) {
    %c0_i32 = arith.constant 0 : i32
    %c0_i32_0 = arith.constant 0 : i32
    %c0_i32_1 = arith.constant 0 : i32
    return %c0_i32, %c0_i32_0 : i32, i32
  }
  func.func @transform_3(%arg0: i32, %arg1: i32) -> (i32, i32) {
    %c0_i32 = arith.constant 0 : i32
    %c0_i32_0 = arith.constant 0 : i32
    %c0_i32_1 = arith.constant 0 : i32
    return %c0_i32, %c0_i32_0 : i32, i32
  }
  func.func @transform_4(%arg0: i32, %arg1: i32) -> (i32, i32) {
    %c0_i32 = arith.constant 0 : i32
    %c0_i32_0 = arith.constant 0 : i32
    return %arg0, %c0_i32 : i32, i32
  }
}

</mosaic_0001>

<bundles_post_ra>
// kernel: tpu_custom_call.1
= control target key start
LH: loop header
LB: loop body
LE: loop exit
PB: predicated region body
PF: predicated region fallthrough
CT: control target
= control target key end

     0   :  { %9 = vsyncpa [#allocation4], 0  ;;  %s1143_s0 = inlined_call_operand.hbm [shape: bf16[128,128], index: 0, kind: input, shape index: {}]   ;;  %s1144_s1 = inlined_call_operand.hbm [shape: bf16[128,128], index: 1, kind: input, shape index: {}]   ;;  %s1145_s2 = inlined_call_operand.hbm [shape: f32[128,128], index: 2, kind: input, shape index: {}]   ;;  %s1146_s3 = inlined_call_operand.vmem [shape: f32[1,128], index: 3, kind: input, shape index: {}]   ;;  %s1147_s4 = inlined_call_operand.hbm [shape: bf16[128,128], index: 4, kind: output, shape index: {}]  }
   0x1   :  { %10 = vsyncpa [#allocation7], 0 }
   0x2   :  { %11 = vsyncpa [#allocation5], 0  ;;  %s1043_s15 = smov [#allocation6]   ;;  %s1044_s17 = smov [#allocation3]  }
   0x3   :  { %s29_s16 = sshll.u32 %s1043_s15, 4  ;;  %s17_s18 = sshll.u32 %s1044_s17, 4  ;;  %s30_s16 = int_to_ptr.vmem [resolvable:$true] %s29_s16  ;;  %s1076_s18 = int_to_ptr.vmem [resolvable:$true] %s17_s18 }
   0x4   :  { %s949_s21 = scalar_lea.hbm %s1144_s1, 1024 }
   0x5   :  { %p950_p0 = scmp.ne.s32.totalorder %s1144_s1, %s949_s21  ;;  %p953_p1 = scmp.lt.u32.totalorder %s949_s21, %s1144_s1 }
   0x7   :  { %p955_p2 = pnand %p953_p1, %p950_p0 }
   0x9   :  { %958 = shalt.err (!%p955_p2)
}
   0xa   :  { %s959_s26 = scalar_lea.vmem %s30_s16, 1024  ;;  %p964_p4 = scmp.lt.s32.totalorder %s30_s16, %s30_s16 }
   0xb   :  { %p960_p3 = scmp.ne.s32.totalorder %s30_s16, %s959_s26  ;;  %p965_p5 = scmp.lt.s32.totalorder %s959_s26, %s959_s26 }
   0xd   :  { %p966_p6 = por %p965_p5, %p964_p4 }
   0xf   :  { %p967_p7 = pnand %p966_p6, %p960_p3 }
  0x11   :  { %970 = shalt.err (!%p967_p7)
}
  0x12   :  { %s1045_s27 = smov 64   ;;  %s1046_s28 = smov 4  }
  0x13   :  { %35 = dma.hbm_to_vmem [thread:$0]  %s1144_s1, 1024, %s30_s16, [#allocation7], %s1045_s27, %s1045_s27, %s1046_s28  }
  0x14   :  { %s971_s7 = scalar_lea.hbm %s1143_s0, 1024 }
  0x15   :  { %p972_p8 = scmp.ne.s32.totalorder %s1143_s0, %s971_s7  ;;  %p975_p9 = scmp.lt.u32.totalorder %s971_s7, %s1143_s0 }
  0x17   :  { %p977_p10 = pnand %p975_p9, %p972_p8 }
  0x19   :  { %980 = shalt.err (!%p977_p10)
}
  0x1a   :  { %s981_s12 = scalar_lea.vmem %s1076_s18, 1024  ;;  %p986_p12 = scmp.lt.s32.totalorder %s1076_s18, %s1076_s18 }
  0x1b   :  { %p982_p11 = scmp.ne.s32.totalorder %s1076_s18, %s981_s12  ;;  %p987_p13 = scmp.lt.s32.totalorder %s981_s12, %s981_s12 }
  0x1d   :  { %p988_p0 = por %p987_p13, %p986_p12 }
  0x1f   :  { %p989_p1 = pnand %p988_p0, %p982_p11 }
  0x21   :  { %992 = shalt.err (!%p989_p1)
}
  0x22   :  { %23 = dma.hbm_to_vmem [thread:$0]  %s1143_s0, 1024, %s1076_s18, [#allocation4], %s1045_s27, %s1045_s27, %s1046_s28  }
  0x23   :  { %s1047_s14 = smov [#allocation8]   ;;  %s993_s19 = scalar_lea.hbm %s1145_s2, 2048 }
  0x24   :  { %s41_s15 = sshll.u32 %s1047_s14, 4  ;;  %p994_p2 = scmp.ne.s32.totalorder %s1145_s2, %s993_s19  ;;  %s42_s15 = int_to_ptr.vmem [resolvable:$true] %s41_s15 }
  0x25   :  { %p997_p3 = scmp.lt.u32.totalorder %s993_s19, %s1145_s2 }
  0x27   :  { %p999_p4 = pnand %p997_p3, %p994_p2 }
  0x29   :  { %1002 = shalt.err (!%p999_p4)
}
  0x2a   :  { %s1003_s24 = scalar_lea.vmem %s42_s15, 2048  ;;  %p1008_p6 = scmp.lt.s32.totalorder %s42_s15, %s42_s15 }
  0x2b   :  { %p1004_p5 = scmp.ne.s32.totalorder %s42_s15, %s1003_s24  ;;  %p1009_p7 = scmp.lt.s32.totalorder %s1003_s24, %s1003_s24 }
  0x2d   :  { %p1010_p8 = por %p1009_p7, %p1008_p6 }
  0x2f   :  { %p1011_p9 = pnand %p1010_p8, %p1004_p5 }
  0x31   :  { %1014 = shalt.err (!%p1011_p9)
}
  0x32   :  { %s1048_s0 = smov 128   ;;  %s1049_s18 = smov 8  }
  0x33   :  { %47 = dma.hbm_to_vmem [thread:$0]  %s1145_s2, 2048, %s42_s15, [#allocation7], %s1048_s0, %s1048_s0, %s1049_s18  }
  0x34   :  { %1037 = dma.done.wait [#allocation4], 1024  }
  0x35   :  { %1038 = vsyncadd [#allocation4], 4294966272 }
  0x36   :  { %1039 = dma.done.wait [#allocation7], 3072  }
  0x37   :  { %1040 = vsyncadd [#allocation7], 4294964224  ;;  %v933_v0 = vld [vmem:[#allocation6] sm:$0xff]   ;;  %v934_v1 = vld [vmem:[#allocation6 + $0x8] sm:$0xff]  }
  0x38   :  { %805 = vmatprep.subr.bf16.mxu0 %v933_v0  ;;  %v935_v2 = vld [vmem:[#allocation6 + $0x10] sm:$0xff]   ;;  %v936_v3 = vld [vmem:[#allocation6 + $0x18] sm:$0xff]   ;;  %v941_v4 = vld [vmem:[#allocation3] sm:$0xff]  }
  0x39   :  { %806 = vmatpush3.bf16.msra.mxu0 %v933_v0  ;;  %821 = vmatprep.mubr.bf16.mxu0 %v941_v4  ;;  %v937_v5 = vld [vmem:[#allocation6 + $0x20] sm:$0xff]   ;;  %v938_v6 = vld [vmem:[#allocation6 + $0x28] sm:$0xff]   ;;  %v379_v9 = vld [vmem:[#allocation8 + $0x10] sm:$0xff] }
  0x3a   :  { %807 = vmatprep.subr.bf16.mxu0 %v934_v1  ;;  %v377_v7 = vld [vmem:[#allocation8] sm:$0xff]  ;;  %v378_v8 = vld [vmem:[#allocation8 + $0x8] sm:$0xff]  ;;  %v380_v11 = vld [vmem:[#allocation8 + $0x18] sm:$0xff] }
  0x3b   :  { %v893_v10 = vpack.c.bf16 %v378_v8, %v377_v7  ;;  %v897_v12 = vpack.c.bf16 %v380_v11, %v379_v9  ;;  %v381_v13 = vld [vmem:[#allocation8 + $0x20] sm:$0xff]  ;;  %v382_v14 = vld [vmem:[#allocation8 + $0x28] sm:$0xff]  ;;  %v939_v15 = vld [vmem:[#allocation6 + $0x30] sm:$0xff]  }
  0x3c   :  { %v901_v16 = vpack.c.bf16 %v382_v14, %v381_v13  ;;  %v383_v17 = vld [vmem:[#allocation8 + $0x30] sm:$0xff]  ;;  %v384_v18 = vld [vmem:[#allocation8 + $0x38] sm:$0xff]  ;;  %v385_v21 = vld [vmem:[#allocation8 + $0x40] sm:$0xff] }
  0x3d   :  { %808 = vmatpush3.bf16.msra.mxu0 %v934_v1  ;;  %894 = vmatprep.subr.bf16.mxu1 %v893_v10  ;;  %v940_v19 = vld [vmem:[#allocation6 + $0x38] sm:$0xff]   ;;  %v905_v20 = vpack.c.bf16 %v384_v18, %v383_v17  ;;  %v386_v22 = vld [vmem:[#allocation8 + $0x48] sm:$0xff]  ;;  %v387_v25 = vld [vmem:[#allocation8 + $0x50] sm:$0xff] }
  0x3e   :  { %809 = vmatprep.subr.bf16.mxu0 %v935_v2  ;;  %896 = vmatpush3.bf16.msra.mxu1 %v893_v10  ;;  %v909_v23 = vpack.c.bf16 %v386_v22, %v385_v21  ;;  %v942_v24 = vld [vmem:[#allocation3 + $0x8] sm:$0xff]   ;;  %v388_v26 = vld [vmem:[#allocation8 + $0x58] sm:$0xff]  ;;  %v943_v27 = vld [vmem:[#allocation3 + $0x10] sm:$0xff]  }
  0x3f   :  { %898 = vmatprep.subr.bf16.mxu1 %v897_v12  ;;  %v913_v28 = vpack.c.bf16 %v388_v26, %v387_v25  ;;  %v389_v29 = vld [vmem:[#allocation8 + $0x60] sm:$0xff]  ;;  %v390_v30 = vld [vmem:[#allocation8 + $0x68] sm:$0xff]  ;;  %v944_v32 = vld [vmem:[#allocation3 + $0x18] sm:$0xff]  }
  0x40   :  { %v917_v31 = vpack.c.bf16 %v390_v30, %v389_v29  ;;  %v945_v33 = vld [vmem:[#allocation3 + $0x20] sm:$0xff]   ;;  %v946_v34 = vld [vmem:[#allocation3 + $0x28] sm:$0xff]   ;;  %v947_v35 = vld [vmem:[#allocation3 + $0x30] sm:$0xff]  }
  0x41   :  { %810 = vmatpush3.bf16.msra.mxu0 %v935_v2  ;;  %v948_v36 = vld [vmem:[#allocation3 + $0x38] sm:$0xff]   ;;  %v391_v37 = vld [vmem:[#allocation8 + $0x70] sm:$0xff]  ;;  %v677_v56 = vld [vmem:[%s1146_s3] ss:$0 sm:$0xff]  ;;  %s1050_s3 = smov [#allocation9]  }
  0x42   :  { %811 = vmatprep.subr.bf16.mxu0 %v936_v3  ;;  %900 = vmatpush3.bf16.msra.mxu1 %v897_v12  ;;  %v392_v38 = vld [vmem:[#allocation8 + $0x78] sm:$0xff]  ;;  %s646_s30 = sshll.u32 %s1050_s3, 4  ;;  %s647_s30 = int_to_ptr.vmem [resolvable:$true] %s646_s30 }
  0x43   :  { %902 = vmatprep.subr.bf16.mxu1 %v901_v16  ;;  %v921_v39 = vpack.c.bf16 %v392_v38, %v391_v37  ;;  %s1015_s5 = scalar_lea.vmem %s647_s30, 1024  ;;  %p1020_p11 = scmp.lt.s32.totalorder %s647_s30, %s647_s30 }
  0x44   :  { %p1016_p10 = scmp.ne.s32.totalorder %s647_s30, %s1015_s5  ;;  %p1021_p12 = scmp.lt.s32.totalorder %s1015_s5, %s1015_s5 }
  0x45   :  { %812 = vmatpush3.bf16.msra.mxu0 %v936_v3 }
  0x46   :  { %813 = vmatprep.subr.bf16.mxu0 %v937_v5  ;;  %904 = vmatpush3.bf16.msra.mxu1 %v901_v16  ;;  %p1022_p13 = por %p1021_p12, %p1020_p11 }
  0x47   :  { %906 = vmatprep.subr.bf16.mxu1 %v905_v20 }
  0x48   :  { %p1023_p0 = pnand %p1022_p13, %p1016_p10 }
  0x49   :  { %814 = vmatpush3.bf16.msra.mxu0 %v937_v5 }
  0x4a   :  { %815 = vmatprep.subr.bf16.mxu0 %v938_v6  ;;  %908 = vmatpush3.bf16.msra.mxu1 %v905_v20 }
  0x4b   :  { %910 = vmatprep.subr.bf16.mxu1 %v909_v23 }
  0x4d   :  { %816 = vmatpush3.bf16.msra.mxu0 %v938_v6 }
  0x4e   :  { %817 = vmatprep.subr.bf16.mxu0 %v939_v15  ;;  %912 = vmatpush3.bf16.msra.mxu1 %v909_v23 }
  0x4f   :  { %914 = vmatprep.subr.bf16.mxu1 %v913_v28 }
  0x51   :  { %818 = vmatpush3.bf16.msra.mxu0 %v939_v15 }
  0x52   :  { %819 = vmatprep.subr.bf16.mxu0 %v940_v19  ;;  %916 = vmatpush3.bf16.msra.mxu1 %v913_v28 }
  0x53   :  { %918 = vmatprep.subr.bf16.mxu1 %v917_v31 }
  0x55   :  { %820 = vmatpush3.bf16.msra.mxu0 %v940_v19 }
  0x56   :  { %920 = vmatpush3.bf16.msra.mxu1 %v917_v31 }
  0x57   :  { %922 = vmatprep.subr.bf16.mxu1 %v921_v39 }
  0x58   :  { %822 = vmatmul.mubr.bf16.vlgmr.msra.gmra.mrb[0].mxu0 %v942_v24 }
  0x59   :  { %825 = vmatprep.mubr.bf16.mxu0 %v943_v27 }
  0x5a   :  { %924 = vmatpush3.bf16.msra.mxu1 %v921_v39 }
  0x60   :  { %826 = vmatmul.mubr.bf16.gmra.mrb[4].mxu0 %v944_v32 }
  0x61   :  { %829 = vmatprep.mubr.bf16.mxu0 %v945_v33 }
  0x68   :  { %830 = vmatmul.mubr.bf16.gmra.mrb[8].mxu0 %v946_v34 }
  0x69   :  { %833 = vmatprep.mubr.bf16.mxu0 %v947_v35 }
  0x70   :  { %834 = vmatmul.mubr.bf16.gmra.mrb[12].mxu0 %v948_v36 }
 0x12b   :  { %v823_v40 = vpop.f32.mrb[0].mxu0 }
 0x12c   :  { %v263_v41 = vpop.f32.mrb[1].mxu0 }
 0x12d   :  { %v824_v42 = vpop.f32.mrb[2].mxu0  ;;  %869 = vmatprep.mubr.f32.mxu1 %v263_v41 }
 0x12e   :  { %v266_v43 = vpop.f32.mrb[3].mxu0 }
 0x12f   :  { %870 = vmatmul.mubr.f32.vlgmr.msra.gmra.mrb[0].mxu1 %v266_v43 }
 0x130   :  { %872 = vmatprep.mubr.f32.mxu1 %v823_v40 }
 0x133   :  { %v827_v44 = vpop.f32.mrb[4].mxu0  ;;  %873 = vmatmul.mubr.f32.gmra.mrb[2].mxu1 %v824_v42 }
 0x134   :  { %v279_v45 = vpop.f32.mrb[5].mxu0 }
 0x135   :  { %v828_v46 = vpop.f32.mrb[6].mxu0  ;;  %875 = vmatprep.mubr.f32.mxu1 %v279_v45 }
 0x136   :  { %v282_v47 = vpop.f32.mrb[7].mxu0 }
 0x137   :  { %876 = vmatmul.mubr.f32.gmra.mrb[4].mxu1 %v282_v47 }
 0x138   :  { %878 = vmatprep.mubr.f32.mxu1 %v827_v44 }
 0x13b   :  { %v831_v48 = vpop.f32.mrb[8].mxu0  ;;  %879 = vmatmul.mubr.f32.gmra.mrb[6].mxu1 %v828_v46 }
 0x13c   :  { %v295_v49 = vpop.f32.mrb[9].mxu0 }
 0x13d   :  { %v832_v50 = vpop.f32.mrb[10].mxu0  ;;  %881 = vmatprep.mubr.f32.mxu1 %v295_v49 }
 0x13e   :  { %v298_v51 = vpop.f32.mrb[11].mxu0 }
 0x13f   :  { %882 = vmatmul.mubr.f32.gmra.mrb[8].mxu1 %v298_v51 }
 0x140   :  { %884 = vmatprep.mubr.f32.mxu1 %v831_v48 }
 0x143   :  { %v835_v52 = vpop.f32.mrb[12].mxu0  ;;  %885 = vmatmul.mubr.f32.gmra.mrb[10].mxu1 %v832_v50 }
 0x144   :  { %v311_v53 = vpop.f32.mrb[13].mxu0 }
 0x145   :  { %v836_v54 = vpop.f32.mrb[14].mxu0  ;;  %887 = vmatprep.mubr.f32.mxu1 %v311_v53 }
 0x146   :  { %v314_v55 = vpop.f32.mrb[15].mxu0 }
 0x147   :  { %888 = vmatmul.mubr.f32.gmra.mrb[12].mxu1 %v314_v55 }
 0x148   :  { %890 = vmatprep.mubr.f32.mxu1 %v835_v52 }
 0x14b   :  { %891 = vmatmul.mubr.f32.gmra.mrb[14].mxu1 %v836_v54 }
 0x202   :  { %v871_v57 = vpop.f32.mrb[0].mxu1 }
 0x203   :  { %v472_v58 = vadd.f32 %v871_v57, %v677_v56  ;;  %v466_v59 = vpop.f32.mrb[1].mxu1 }
 0x204   :  { %v467_v60 = vadd.f32 %v677_v56, %v466_v59 }
 0x205   :  { %v546_v61 = vmax.f32 %v472_v58, 0.0 }
 0x206   :  { %v545_v62 = vmax.f32 %v467_v60, 0.0  ;;  %v874_v63 = vpop.f32.mrb[2].mxu1 }
 0x207   :  { %v482_v0 = vadd.f32 %v874_v63, %v677_v56  ;;  %v476_v1 = vpop.f32.mrb[3].mxu1 }
 0x208   :  { %v713_v2 = vpack.c.bf16 %v546_v61, %v545_v62  ;;  %v477_v3 = vadd.f32 %v677_v56, %v476_v1 }
 0x209   :  { %v548_v4 = vmax.f32 %v482_v0, 0.0 }
 0x20a   :  { %714 = vst [vmem:[#allocation9] sm:$0xff] %v713_v2   ;;  %v547_v5 = vmax.f32 %v477_v3, 0.0  ;;  %v877_v6 = vpop.f32.mrb[4].mxu1 }
 0x20b   :  { %v492_v7 = vadd.f32 %v877_v6, %v677_v56  ;;  %v486_v8 = vpop.f32.mrb[5].mxu1 }
 0x20c   :  { %v718_v9 = vpack.c.bf16 %v548_v4, %v547_v5  ;;  %v487_v10 = vadd.f32 %v677_v56, %v486_v8 }
 0x20d   :  { %v550_v11 = vmax.f32 %v492_v7, 0.0 }
 0x20e   :  { %750 = vst [vmem:[#allocation9 + $0x8] sm:$0xff] %v718_v9   ;;  %v549_v12 = vmax.f32 %v487_v10, 0.0  ;;  %v880_v13 = vpop.f32.mrb[6].mxu1 }
 0x20f   :  { %v502_v14 = vadd.f32 %v880_v13, %v677_v56  ;;  %v496_v15 = vpop.f32.mrb[7].mxu1 }
 0x210   :  { %v723_v16 = vpack.c.bf16 %v550_v11, %v549_v12  ;;  %v497_v17 = vadd.f32 %v677_v56, %v496_v15 }
 0x211   :  { %v552_v18 = vmax.f32 %v502_v14, 0.0 }
 0x212   :  { %751 = vst [vmem:[#allocation9 + $0x10] sm:$0xff] %v723_v16   ;;  %v551_v19 = vmax.f32 %v497_v17, 0.0  ;;  %v883_v20 = vpop.f32.mrb[8].mxu1 }
 0x213   :  { %v512_v21 = vadd.f32 %v883_v20, %v677_v56  ;;  %v506_v22 = vpop.f32.mrb[9].mxu1 }
 0x214   :  { %v728_v23 = vpack.c.bf16 %v552_v18, %v551_v19  ;;  %v507_v24 = vadd.f32 %v677_v56, %v506_v22 }
 0x215   :  { %v554_v25 = vmax.f32 %v512_v21, 0.0 }
 0x216   :  { %752 = vst [vmem:[#allocation9 + $0x18] sm:$0xff] %v728_v23   ;;  %v553_v26 = vmax.f32 %v507_v24, 0.0  ;;  %v886_v27 = vpop.f32.mrb[10].mxu1 }
 0x217   :  { %v522_v28 = vadd.f32 %v886_v27, %v677_v56  ;;  %v516_v29 = vpop.f32.mrb[11].mxu1 }
 0x218   :  { %v733_v30 = vpack.c.bf16 %v554_v25, %v553_v26  ;;  %v517_v31 = vadd.f32 %v677_v56, %v516_v29 }
 0x219   :  { %v556_v32 = vmax.f32 %v522_v28, 0.0 }
 0x21a   :  { %753 = vst [vmem:[#allocation9 + $0x20] sm:$0xff] %v733_v30   ;;  %v555_v33 = vmax.f32 %v517_v31, 0.0  ;;  %v889_v34 = vpop.f32.mrb[12].mxu1 }
 0x21b   :  { %v532_v35 = vadd.f32 %v889_v34, %v677_v56  ;;  %v526_v36 = vpop.f32.mrb[13].mxu1 }
 0x21c   :  { %v738_v37 = vpack.c.bf16 %v556_v32, %v555_v33  ;;  %v527_v38 = vadd.f32 %v677_v56, %v526_v36 }
 0x21d   :  { %v558_v39 = vmax.f32 %v532_v35, 0.0 }
 0x21e   :  { %754 = vst [vmem:[#allocation9 + $0x28] sm:$0xff] %v738_v37   ;;  %v557_v40 = vmax.f32 %v527_v38, 0.0  ;;  %v892_v41 = vpop.f32.mrb[14].mxu1 }
 0x21f   :  { %v542_v42 = vadd.f32 %v892_v41, %v677_v56  ;;  %v536_v43 = vpop.f32.mrb[15].mxu1 }
 0x220   :  { %v743_v44 = vpack.c.bf16 %v558_v39, %v557_v40  ;;  %v537_v45 = vadd.f32 %v677_v56, %v536_v43 }
 0x221   :  { %v560_v46 = vmax.f32 %v542_v42, 0.0 }
 0x222   :  { %755 = vst [vmem:[#allocation9 + $0x30] sm:$0xff] %v743_v44   ;;  %v559_v47 = vmax.f32 %v537_v45, 0.0 }
 0x224   :  { %v748_v48 = vpack.c.bf16 %v560_v46, %v559_v47 }
 0x226   :  { %756 = vst [vmem:[#allocation9 + $0x38] sm:$0xff] %v748_v48  }
 0x227   :  { %1026 = shalt.err (!%p1023_p0)
}
 0x228   :  { %s1027_s8 = scalar_lea.hbm %s1147_s4, 1024 }
 0x229   :  { %p1028_p1 = scmp.ne.s32.totalorder %s1147_s4, %s1027_s8  ;;  %p1031_p2 = scmp.lt.u32.totalorder %s1027_s8, %s1147_s4 }
 0x22b   :  { %p1033_p3 = pnand %p1031_p2, %p1028_p1 }
 0x22d   :  { %1036 = shalt.err (!%p1033_p3)
}
 0x22e   :  { %652 = dma.vmem_to_hbm [thread:$0]  %s647_s30, 1024, %s1147_s4, [#allocation5], %s1045_s27, %s1045_s27, %s1046_s28  }
 0x22f   :  { %1041 = dma.done.wait [#allocation5], 1024  }
 0x230   :  { %1042 = vsyncadd [#allocation5], 4294966272 }
 0x231   :  { %656 = vsyncpa [#allocation4], 1 }
 0x232   :  { %657 = vsyncpa [#allocation7], 1 }
 0x233   :  { %658 = vsyncpa [#allocation5], 1 }

</bundles_post_ra>
